<compile_context>
chip_gen: v7x
topology: tpu7x:2x2x1
jax: 0.10.0
libtpu: 0.0.40
codegen_flags: <defaults>
</compile_context>

<pallas_src>
import jax
import jax.numpy as jnp
from jax.experimental import pallas as pl
from jax.experimental.pallas import tpu as pltpu


def _make_kernel(H, W, K):
    """Builds the fused conv + GroupNorm kernel for static (H, W, K=3)."""
    HW = H * W
    EPS = 1e-5  # nn.GroupNorm default

    def kernel(x_ref, w_ref, b_ref, g_ref, bt_ref, o_ref):
        # x_ref : (Cin, Lp)        H-reflect-padded, flattened input for one
        #                          batch element; Lp = Hp*W + 2 rounded to 128.
        #                          x_ref[:, 1 + r*W + c] == x_padH[:, r, c].
        # w_ref : (K*K, Cout, Cin) per-tap conv weights, tap index ky*K + kx.
        # b_ref : (Cout, 1)        conv bias (f32)
        # g_ref : (Cout, 1)        GroupNorm gamma (f32)
        # bt_ref: (Cout, 1)        GroupNorm beta (f32)
        # o_ref : (Cout, HW)       normalized output
        cout = o_ref.shape[0]

        # Column-within-row index (built once; (1, HW), broadcasts over Cin).
        col = jax.lax.broadcasted_iota(jnp.int32, (1, HW), 1) % W
        left_edge = col == 0          # output column 0  -> reflect to column 1
        right_edge = col == (W - 1)   # output column W-1 -> reflect to column W-2

        # Convolution: 9 accumulating (Cout, Cin) @ (Cin, HW) MXU dots over
        # lane-shifted views of the VMEM-resident input (no HBM im2col).
        acc = jnp.zeros((cout, HW), jnp.float32)
        for ky in range(K):
            base = ky * W
            # Contiguous flattened windows at horizontal offsets -1, 0, +1.
            # (The +1 in the addressing is the one-element front flat pad.)
            s0 = x_ref[:, base + 0: base + 0 + HW]   # column w-1 (raw)
            s1 = x_ref[:, base + 1: base + 1 + HW]   # column w   (exact)
            s2 = x_ref[:, base + 2: base + 2 + HW]   # column w+1 (raw)
            # Fix the reflection boundary: at w==0 the left tap is column 1,
            # at w==W-1 the right tap is column W-2.
            taps = (
                jnp.where(left_edge, s2, s0),   # kx = 0
                s1,                              # kx = 1
                jnp.where(right_edge, s0, s2),  # kx = 2
            )
            for kx in range(K):
                w_t = w_ref[ky * K + kx]         # (Cout, Cin)
                acc = acc + jnp.dot(w_t, taps[kx],
                                    preferred_element_type=jnp.float32)

        # GroupNorm(num_groups=1) in one pass over `acc`, with the conv bias
        # folded into the statistics (y = acc + b is never materialized).
        n = float(cout * HW)
        b = b_ref[...]                                        # (Cout, 1)
        row_sum = jnp.sum(acc, axis=1, keepdims=True)         # (Cout, 1)
        row_ssq = jnp.sum(acc * acc, axis=1, keepdims=True)   # (Cout, 1)
        s1_tot = jnp.sum(row_sum + HW * b, axis=0, keepdims=True)          # (1,1)
        s2_tot = jnp.sum(row_ssq + 2.0 * b * row_sum + HW * (b * b),
                         axis=0, keepdims=True)                            # (1,1)
        mean = s1_tot / n
        var = s2_tot / n - mean * mean
        inv = jax.lax.rsqrt(var + EPS)

        scale = g_ref[...] * inv                       # (Cout, 1)
        shift = (b - mean) * scale + bt_ref[...]       # (Cout, 1)
        # Single fused elementwise pass over the (Cout, HW) tile.
        o_ref[...] = (acc * scale + shift).astype(o_ref.dtype)

    return kernel


def reflection_conv_no_act(x, weight, bias, gamma, beta):
    """Pallas implementation of ReflectionConvNoAct.forward (groups=1, k=3).

    x:      (B, Cin, H, W)
    weight: (Cout, Cin, K, K)   (PyTorch OIHW layout)
    bias:   (Cout,)
    gamma:  (Cout,)   GroupNorm weight
    beta:   (Cout,)   GroupNorm bias
    returns (B, Cout, H, W)
    """
    B, Cin, H, W = x.shape
    Cout, Cin_w, K, K2 = weight.shape
    assert K == K2 == 3, "only kernel_size=3 (the module default) is supported"
    assert Cin == Cin_w, "groups > 1 not supported"
    assert H >= 2 and W >= 2, "reflection padding needs spatial dims >= 2"
    pad = K // 2
    HW = H * W
    Hp = H + 2 * pad

    # --- layout glue (one cheap pass, no 9x im2col) ---------------------------
    # Reflect-pad along H only; the W-direction reflection is handled in-kernel.
    xh = jnp.pad(x, ((0, 0), (0, 0), (pad, pad), (0, 0)), mode="reflect")
    flat_len = Hp * W
    # +1 front element (for the kx=-1 window) and pad the lane dim to a
    # multiple of 128 for unmasked input DMA.
    Lp = ((flat_len + 2 + 127) // 128) * 128
    xf = jnp.pad(xh.reshape(B, Cin, flat_len),
                 ((0, 0), (0, 0), (1, Lp - flat_len - 1)))

    # Per-tap weights: (K, K, Cout, Cin) -> (K*K, Cout, Cin), tap = ky*K + kx.
    w3 = jnp.transpose(weight, (2, 3, 0, 1)).reshape(K * K, Cout, Cin).astype(x.dtype)
    b2 = bias.reshape(Cout, 1).astype(jnp.float32)
    g2 = gamma.reshape(Cout, 1).astype(jnp.float32)
    bt2 = beta.reshape(Cout, 1).astype(jnp.float32)

    # Scoped-VMEM budget: double-buffered input + output blocks, the shifted-tap
    # temporaries, the f32 accumulator and the weights, with 2x headroom,
    # capped at 64 MiB so the request is also valid on v7x.
    f32b = 4
    est = f32b * (2 * Cin * Lp          # input block (double-buffered)
                  + 2 * Cout * HW       # output block (double-buffered)
                  + 6 * Cin * HW        # shifted-tap temporaries
                  + 2 * Cout * HW       # accumulator + store staging
                  + K * K * Cout * Cin  # weights
                  + 16 * Cout)
    vmem_limit = int(min(max(2 * est, 32 * 1024 * 1024), 64 * 1024 * 1024))

    out = pl.pallas_call(
        _make_kernel(H, W, K),
        out_shape=jax.ShapeDtypeStruct((B, Cout, HW), x.dtype),
        grid_spec=pltpu.PrefetchScalarGridSpec(
            num_scalar_prefetch=0,
            grid=(B,),
            in_specs=[
                pl.BlockSpec((None, Cin, Lp), lambda b: (b, 0, 0)),       # input
                pl.BlockSpec((K * K, Cout, Cin), lambda b: (0, 0, 0)),    # weights
                pl.BlockSpec((Cout, 1), lambda b: (0, 0)),                # bias
                pl.BlockSpec((Cout, 1), lambda b: (0, 0)),                # gamma
                pl.BlockSpec((Cout, 1), lambda b: (0, 0)),                # beta
            ],
            out_specs=pl.BlockSpec((None, Cout, HW), lambda b: (b, 0, 0)),
        ),
        compiler_params=pltpu.CompilerParams(
            dimension_semantics=("parallel",),
            vmem_limit_bytes=vmem_limit,
        ),
    )(xf, w3, b2, g2, bt2)

    # Contiguous (free) reshape back to NCHW.
    return out.reshape(B, Cout, H, W)


def ref_forward(x, weight, bias, gamma, beta, eps=1e-5):
    """Pure-JAX reference matching the PyTorch module exactly."""
    K = weight.shape[-1]
    pad = K // 2
    xp = jnp.pad(x, ((0, 0), (0, 0), (pad, pad), (pad, pad)), mode="reflect")
    y = jax.lax.conv_general_dilated(
        xp, weight, window_strides=(1, 1), padding="VALID",
        dimension_numbers=("NCHW", "OIHW", "NCHW"),
        precision=jax.lax.Precision.HIGHEST,
    )
    y = y + bias[None, :, None, None]
    mean = jnp.mean(y, axis=(1, 2, 3), keepdims=True)
    var = jnp.mean((y - mean) ** 2, axis=(1, 2, 3), keepdims=True)
    yn = (y - mean) * jax.lax.rsqrt(var + eps)
    return yn * gamma[None, :, None, None] + beta[None, :, None, None]


if __name__ == "__main__":
    key = jax.random.PRNGKey(0)
    k_x, k_w, k_b, k_g, k_bt = jax.random.split(key, 5)

    B, Cin, Cout, H, W, K = 2, 4, 8, 16, 16, 3
    x = jax.random.normal(k_x, (B, Cin, H, W), dtype=jnp.float32)
    weight = 0.1 * jax.random.normal(k_w, (Cout, Cin, K, K), dtype=jnp.float32)
    bias = 0.1 * jax.random.normal(k_b, (Cout,), dtype=jnp.float32)
    gamma = 1.0 + 0.1 * jax.random.normal(k_g, (Cout,), dtype=jnp.float32)
    beta = 0.1 * jax.random.normal(k_bt, (Cout,), dtype=jnp.float32)

    out = jax.block_until_ready(reflection_conv_no_act(x, weight, bias, gamma, beta))
    ref = ref_forward(x, weight, bias, gamma, beta)

    assert out.shape == (B, Cout, H, W), out.shape
    assert out.dtype == ref.dtype
    max_err = float(jnp.max(jnp.abs(out - ref)))
    # The in-kernel conv runs at the MXU's default f32 matmul precision while
    # the reference uses Precision.HIGHEST, and the one-pass variance uses
    # E[y^2] - mean^2, so allow a modest tolerance.
    if not bool(jnp.allclose(out, ref, atol=2e-2, rtol=2e-2)):
        raise SystemExit(
            f"ReflectionConvNoAct Pallas kernel mismatch vs reference "
            f"(max abs err {max_err:.3e})"
        )
    print("KERNEL_OK")
</pallas_src>

<mosaic_0001>
module attributes {stable_mosaic.version = 11 : i64} {
  func.func @kernel(%arg0: i32, %arg1: memref<1x4x384xf32, #tpu.memory_space<vmem>>, %arg2: memref<9x8x4xf32, #tpu.memory_space<vmem>>, %arg3: memref<8x1xf32, #tpu.memory_space<vmem>>, %arg4: memref<8x1xf32, #tpu.memory_space<vmem>>, %arg5: memref<8x1xf32, #tpu.memory_space<vmem>>, %arg6: memref<1x8x256xf32, #tpu.memory_space<vmem>>) attributes {dimension_semantics = [#tpu.dimension_semantics<parallel>], iteration_bounds = array<i64: 2>, scalar_prefetch = 0 : i64, scratch_operands = 0 : i64, tpu.core_type = #tpu.core_type<tc>, window_params = [{transform_indices = @transform_0, window_bounds = array<i64: 1, 4, 384>}, {pipeline_mode = #tpu.pipeline_mode<synchronous>, transform_indices = @transform_1, window_bounds = array<i64: 9, 8, 4>}, {pipeline_mode = #tpu.pipeline_mode<synchronous>, transform_indices = @transform_2, window_bounds = array<i64: 8, 1>}, {pipeline_mode = #tpu.pipeline_mode<synchronous>, transform_indices = @transform_3, window_bounds = array<i64: 8, 1>}, {pipeline_mode = #tpu.pipeline_mode<synchronous>, transform_indices = @transform_4, window_bounds = array<i64: 8, 1>}, {transform_indices = @transform_5, window_bounds = array<i64: 1, 8, 256>}]} {
    %0 = tpu.iota {dimensions = array<i32: 1>} : vector<1x256xi32>
    %c16_i32 = arith.constant 16 : i32
    %c0_i32 = arith.constant 0 : i32
    %1 = arith.cmpi eq, %c16_i32, %c0_i32 : i32
    %c1_i32 = arith.constant 1 : i32
    %2 = arith.select %1, %c1_i32, %c16_i32 : i32
    %3 = vector.broadcast %2 : i32 to vector<1x256xi32>
    %4 = arith.remsi %0, %3 : vector<1x256xi32>
    %c0_i32_0 = arith.constant 0 : i32
    %5 = vector.broadcast %c0_i32_0 : i32 to vector<1x256xi32>
    %6 = arith.cmpi ne, %4, %5 : vector<1x256xi32>
    %c0_i32_1 = arith.constant 0 : i32
    %7 = vector.broadcast %c0_i32_1 : i32 to vector<1x256xi32>
    %8 = arith.cmpi slt, %4, %7 : vector<1x256xi32>
    %c0_i32_2 = arith.constant 0 : i32
    %9 = arith.cmpi slt, %2, %c0_i32_2 : i32
    %10 = vector.broadcast %9 : i1 to vector<1x256xi1>
    %11 = vector.broadcast %10 : vector<1x256xi1> to vector<1x256xi1>
    %12 = arith.xori %8, %11 : vector<1x256xi1>
    %13 = arith.andi %12, %6 : vector<1x256xi1>
    %14 = vector.broadcast %2 : i32 to vector<1x256xi32>
    %15 = arith.addi %4, %14 : vector<1x256xi32>
    %16 = arith.select %13, %15, %4 : vector<1x256xi1>, vector<1x256xi32>
    %c0_i32_3 = arith.constant 0 : i32
    %17 = vector.broadcast %c0_i32_3 : i32 to vector<1x256xi32>
    %18 = arith.cmpi eq, %16, %17 : vector<1x256xi32>
    %c15_i32 = arith.constant 15 : i32
    %19 = vector.broadcast %c15_i32 : i32 to vector<1x256xi32>
    %20 = arith.cmpi eq, %16, %19 : vector<1x256xi32>
    %cst = arith.constant 0.000000e+00 : f32
    %21 = vector.broadcast %cst : f32 to vector<8x256xf32>
    %c0 = arith.constant 0 : index
    %c0_4 = arith.constant 0 : index
    %c0_5 = arith.constant 0 : index
    %22 = vector.load %arg1[%c0, %c0_4, %c0_5] : memref<1x4x384xf32, #tpu.memory_space<vmem>>, vector<1x4x256xf32>
    %23 = vector.shape_cast %22 : vector<1x4x256xf32> to vector<4x256xf32>
    %c0_6 = arith.constant 0 : index
    %c0_7 = arith.constant 0 : index
    %c1 = arith.constant 1 : index
    %24 = vector.load %arg1[%c0_6, %c0_7, %c1] : memref<1x4x384xf32, #tpu.memory_space<vmem>>, vector<1x4x256xf32>
    %25 = vector.shape_cast %24 : vector<1x4x256xf32> to vector<4x256xf32>
    %c0_8 = arith.constant 0 : index
    %c0_9 = arith.constant 0 : index
    %c2 = arith.constant 2 : index
    %26 = vector.load %arg1[%c0_8, %c0_9, %c2] : memref<1x4x384xf32, #tpu.memory_space<vmem>>, vector<1x4x256xf32>
    %27 = vector.shape_cast %26 : vector<1x4x256xf32> to vector<4x256xf32>
    %28 = vector.shape_cast %18 : vector<1x256xi1> to vector<1x256xi1>
    %29 = vector.broadcast %28 : vector<1x256xi1> to vector<4x256xi1>
    %30 = arith.select %29, %27, %23 : vector<4x256xi1>, vector<4x256xf32>
    %31 = vector.shape_cast %20 : vector<1x256xi1> to vector<1x256xi1>
    %32 = vector.broadcast %31 : vector<1x256xi1> to vector<4x256xi1>
    %33 = arith.select %32, %23, %27 : vector<4x256xi1>, vector<4x256xf32>
    %c0_10 = arith.constant 0 : index
    %c0_11 = arith.constant 0 : index
    %c0_12 = arith.constant 0 : index
    %34 = vector.load %arg2[%c0_10, %c0_11, %c0_12] : memref<9x8x4xf32, #tpu.memory_space<vmem>>, vector<1x8x4xf32>
    %35 = vector.shape_cast %34 : vector<1x8x4xf32> to vector<8x4xf32>
    %cst_13 = arith.constant dense<0.000000e+00> : vector<8x256xf32>
    %36 = tpu.matmul %35, %30, %cst_13 {dimension_numbers = #tpu.dot_dimension_numbers<[1], [0], [0], [1], [0, 0, 1, 1], [], []>} : vector<8x4xf32>, vector<4x256xf32>, vector<8x256xf32> -> vector<8x256xf32>
    %37 = arith.addf %21, %36 : vector<8x256xf32>
    %c1_14 = arith.constant 1 : index
    %c0_15 = arith.constant 0 : index
    %c0_16 = arith.constant 0 : index
    %38 = vector.load %arg2[%c1_14, %c0_15, %c0_16] : memref<9x8x4xf32, #tpu.memory_space<vmem>>, vector<1x8x4xf32>
    %39 = vector.shape_cast %38 : vector<1x8x4xf32> to vector<8x4xf32>
    %cst_17 = arith.constant dense<0.000000e+00> : vector<8x256xf32>
    %40 = tpu.matmul %39, %25, %cst_17 {dimension_numbers = #tpu.dot_dimension_numbers<[1], [0], [0], [1], [0, 0, 1, 1], [], []>} : vector<8x4xf32>, vector<4x256xf32>, vector<8x256xf32> -> vector<8x256xf32>
    %41 = arith.addf %37, %40 : vector<8x256xf32>
    %c2_18 = arith.constant 2 : index
    %c0_19 = arith.constant 0 : index
    %c0_20 = arith.constant 0 : index
    %42 = vector.load %arg2[%c2_18, %c0_19, %c0_20] : memref<9x8x4xf32, #tpu.memory_space<vmem>>, vector<1x8x4xf32>
    %43 = vector.shape_cast %42 : vector<1x8x4xf32> to vector<8x4xf32>
    %cst_21 = arith.constant dense<0.000000e+00> : vector<8x256xf32>
    %44 = tpu.matmul %43, %33, %cst_21 {dimension_numbers = #tpu.dot_dimension_numbers<[1], [0], [0], [1], [0, 0, 1, 1], [], []>} : vector<8x4xf32>, vector<4x256xf32>, vector<8x256xf32> -> vector<8x256xf32>
    %45 = arith.addf %41, %44 : vector<8x256xf32>
    %c0_22 = arith.constant 0 : index
    %c0_23 = arith.constant 0 : index
    %c16 = arith.constant 16 : index
    %46 = vector.load %arg1[%c0_22, %c0_23, %c16] : memref<1x4x384xf32, #tpu.memory_space<vmem>>, vector<1x4x256xf32>
    %47 = vector.shape_cast %46 : vector<1x4x256xf32> to vector<4x256xf32>
    %c0_24 = arith.constant 0 : index
    %c0_25 = arith.constant 0 : index
    %c17 = arith.constant 17 : index
    %48 = vector.load %arg1[%c0_24, %c0_25, %c17] : memref<1x4x384xf32, #tpu.memory_space<vmem>>, vector<1x4x256xf32>
    %49 = vector.shape_cast %48 : vector<1x4x256xf32> to vector<4x256xf32>
    %c0_26 = arith.constant 0 : index
    %c0_27 = arith.constant 0 : index
    %c18 = arith.constant 18 : index
    %50 = vector.load %arg1[%c0_26, %c0_27, %c18] : memref<1x4x384xf32, #tpu.memory_space<vmem>>, vector<1x4x256xf32>
    %51 = vector.shape_cast %50 : vector<1x4x256xf32> to vector<4x256xf32>
    %52 = vector.shape_cast %18 : vector<1x256xi1> to vector<1x256xi1>
    %53 = vector.broadcast %52 : vector<1x256xi1> to vector<4x256xi1>
    %54 = arith.select %53, %51, %47 : vector<4x256xi1>, vector<4x256xf32>
    %55 = vector.shape_cast %20 : vector<1x256xi1> to vector<1x256xi1>
    %56 = vector.broadcast %55 : vector<1x256xi1> to vector<4x256xi1>
    %57 = arith.select %56, %47, %51 : vector<4x256xi1>, vector<4x256xf32>
    %c3 = arith.constant 3 : index
    %c0_28 = arith.constant 0 : index
    %c0_29 = arith.constant 0 : index
    %58 = vector.load %arg2[%c3, %c0_28, %c0_29] : memref<9x8x4xf32, #tpu.memory_space<vmem>>, vector<1x8x4xf32>
    %59 = vector.shape_cast %58 : vector<1x8x4xf32> to vector<8x4xf32>
    %cst_30 = arith.constant dense<0.000000e+00> : vector<8x256xf32>
    %60 = tpu.matmul %59, %54, %cst_30 {dimension_numbers = #tpu.dot_dimension_numbers<[1], [0], [0], [1], [0, 0, 1, 1], [], []>} : vector<8x4xf32>, vector<4x256xf32>, vector<8x256xf32> -> vector<8x256xf32>
    %61 = arith.addf %45, %60 : vector<8x256xf32>
    %c4 = arith.constant 4 : index
    %c0_31 = arith.constant 0 : index
    %c0_32 = arith.constant 0 : index
    %62 = vector.load %arg2[%c4, %c0_31, %c0_32] : memref<9x8x4xf32, #tpu.memory_space<vmem>>, vector<1x8x4xf32>
    %63 = vector.shape_cast %62 : vector<1x8x4xf32> to vector<8x4xf32>
    %cst_33 = arith.constant dense<0.000000e+00> : vector<8x256xf32>
    %64 = tpu.matmul %63, %49, %cst_33 {dimension_numbers = #tpu.dot_dimension_numbers<[1], [0], [0], [1], [0, 0, 1, 1], [], []>} : vector<8x4xf32>, vector<4x256xf32>, vector<8x256xf32> -> vector<8x256xf32>
    %65 = arith.addf %61, %64 : vector<8x256xf32>
    %c5 = arith.constant 5 : index
    %c0_34 = arith.constant 0 : index
    %c0_35 = arith.constant 0 : index
    %66 = vector.load %arg2[%c5, %c0_34, %c0_35] : memref<9x8x4xf32, #tpu.memory_space<vmem>>, vector<1x8x4xf32>
    %67 = vector.shape_cast %66 : vector<1x8x4xf32> to vector<8x4xf32>
    %cst_36 = arith.constant dense<0.000000e+00> : vector<8x256xf32>
    %68 = tpu.matmul %67, %57, %cst_36 {dimension_numbers = #tpu.dot_dimension_numbers<[1], [0], [0], [1], [0, 0, 1, 1], [], []>} : vector<8x4xf32>, vector<4x256xf32>, vector<8x256xf32> -> vector<8x256xf32>
    %69 = arith.addf %65, %68 : vector<8x256xf32>
    %c0_37 = arith.constant 0 : index
    %c0_38 = arith.constant 0 : index
    %c32 = arith.constant 32 : index
    %70 = vector.load %arg1[%c0_37, %c0_38, %c32] : memref<1x4x384xf32, #tpu.memory_space<vmem>>, vector<1x4x256xf32>
    %71 = vector.shape_cast %70 : vector<1x4x256xf32> to vector<4x256xf32>
    %c0_39 = arith.constant 0 : index
    %c0_40 = arith.constant 0 : index
    %c33 = arith.constant 33 : index
    %72 = vector.load %arg1[%c0_39, %c0_40, %c33] : memref<1x4x384xf32, #tpu.memory_space<vmem>>, vector<1x4x256xf32>
    %73 = vector.shape_cast %72 : vector<1x4x256xf32> to vector<4x256xf32>
    %c0_41 = arith.constant 0 : index
    %c0_42 = arith.constant 0 : index
    %c34 = arith.constant 34 : index
    %74 = vector.load %arg1[%c0_41, %c0_42, %c34] : memref<1x4x384xf32, #tpu.memory_space<vmem>>, vector<1x4x256xf32>
    %75 = vector.shape_cast %74 : vector<1x4x256xf32> to vector<4x256xf32>
    %76 = vector.shape_cast %18 : vector<1x256xi1> to vector<1x256xi1>
    %77 = vector.broadcast %76 : vector<1x256xi1> to vector<4x256xi1>
    %78 = arith.select %77, %75, %71 : vector<4x256xi1>, vector<4x256xf32>
    %79 = vector.shape_cast %20 : vector<1x256xi1> to vector<1x256xi1>
    %80 = vector.broadcast %79 : vector<1x256xi1> to vector<4x256xi1>
    %81 = arith.select %80, %71, %75 : vector<4x256xi1>, vector<4x256xf32>
    %c6 = arith.constant 6 : index
    %c0_43 = arith.constant 0 : index
    %c0_44 = arith.constant 0 : index
    %82 = vector.load %arg2[%c6, %c0_43, %c0_44] : memref<9x8x4xf32, #tpu.memory_space<vmem>>, vector<1x8x4xf32>
    %83 = vector.shape_cast %82 : vector<1x8x4xf32> to vector<8x4xf32>
    %cst_45 = arith.constant dense<0.000000e+00> : vector<8x256xf32>
    %84 = tpu.matmul %83, %78, %cst_45 {dimension_numbers = #tpu.dot_dimension_numbers<[1], [0], [0], [1], [0, 0, 1, 1], [], []>} : vector<8x4xf32>, vector<4x256xf32>, vector<8x256xf32> -> vector<8x256xf32>
    %85 = arith.addf %69, %84 : vector<8x256xf32>
    %c7 = arith.constant 7 : index
    %c0_46 = arith.constant 0 : index
    %c0_47 = arith.constant 0 : index
    %86 = vector.load %arg2[%c7, %c0_46, %c0_47] : memref<9x8x4xf32, #tpu.memory_space<vmem>>, vector<1x8x4xf32>
    %87 = vector.shape_cast %86 : vector<1x8x4xf32> to vector<8x4xf32>
    %cst_48 = arith.constant dense<0.000000e+00> : vector<8x256xf32>
    %88 = tpu.matmul %87, %73, %cst_48 {dimension_numbers = #tpu.dot_dimension_numbers<[1], [0], [0], [1], [0, 0, 1, 1], [], []>} : vector<8x4xf32>, vector<4x256xf32>, vector<8x256xf32> -> vector<8x256xf32>
    %89 = arith.addf %85, %88 : vector<8x256xf32>
    %c8 = arith.constant 8 : index
    %c0_49 = arith.constant 0 : index
    %c0_50 = arith.constant 0 : index
    %90 = vector.load %arg2[%c8, %c0_49, %c0_50] : memref<9x8x4xf32, #tpu.memory_space<vmem>>, vector<1x8x4xf32>
    %91 = vector.shape_cast %90 : vector<1x8x4xf32> to vector<8x4xf32>
    %cst_51 = arith.constant dense<0.000000e+00> : vector<8x256xf32>
    %92 = tpu.matmul %91, %81, %cst_51 {dimension_numbers = #tpu.dot_dimension_numbers<[1], [0], [0], [1], [0, 0, 1, 1], [], []>} : vector<8x4xf32>, vector<4x256xf32>, vector<8x256xf32> -> vector<8x256xf32>
    %93 = arith.addf %89, %92 : vector<8x256xf32>
    %c0_52 = arith.constant 0 : index
    %c0_53 = arith.constant 0 : index
    %94 = vector.load %arg3[%c0_52, %c0_53] : memref<8x1xf32, #tpu.memory_space<vmem>>, vector<8x1xf32>
    %cst_54 = arith.constant dense<0.000000e+00> : vector<8xf32>
    %95 = vector.multi_reduction <add>, %93, %cst_54 [1] : vector<8x256xf32> to vector<8xf32>
    %96 = vector.shape_cast %95 : vector<8xf32> to vector<8x1xf32>
    %97 = arith.mulf %93, %93 : vector<8x256xf32>
    %cst_55 = arith.constant dense<0.000000e+00> : vector<8xf32>
    %98 = vector.multi_reduction <add>, %97, %cst_55 [1] : vector<8x256xf32> to vector<8xf32>
    %99 = vector.shape_cast %98 : vector<8xf32> to vector<8x1xf32>
    %cst_56 = arith.constant 2.560000e+02 : f32
    %100 = vector.broadcast %cst_56 : f32 to vector<8x1xf32>
    %101 = arith.mulf %100, %94 : vector<8x1xf32>
    %102 = arith.addf %96, %101 : vector<8x1xf32>
    %cst_57 = arith.constant dense<0.000000e+00> : vector<1xf32>
    %103 = vector.multi_reduction <add>, %102, %cst_57 [0] : vector<8x1xf32> to vector<1xf32>
    %104 = vector.shape_cast %103 : vector<1xf32> to vector<1x1xf32>
    %cst_58 = arith.constant 2.000000e+00 : f32
    %105 = vector.broadcast %cst_58 : f32 to vector<8x1xf32>
    %106 = arith.mulf %105, %94 : vector<8x1xf32>
    %107 = arith.mulf %106, %96 : vector<8x1xf32>
    %108 = arith.addf %99, %107 : vector<8x1xf32>
    %109 = arith.mulf %94, %94 : vector<8x1xf32>
    %cst_59 = arith.constant 2.560000e+02 : f32
    %110 = vector.broadcast %cst_59 : f32 to vector<8x1xf32>
    %111 = arith.mulf %110, %109 : vector<8x1xf32>
    %112 = arith.addf %108, %111 : vector<8x1xf32>
    %cst_60 = arith.constant dense<0.000000e+00> : vector<1xf32>
    %113 = vector.multi_reduction <add>, %112, %cst_60 [0] : vector<8x1xf32> to vector<1xf32>
    %114 = vector.shape_cast %113 : vector<1xf32> to vector<1x1xf32>
    %cst_61 = arith.constant 2.048000e+03 : f32
    %115 = vector.broadcast %cst_61 : f32 to vector<1x1xf32>
    %116 = arith.divf %104, %115 : vector<1x1xf32>
    %cst_62 = arith.constant 2.048000e+03 : f32
    %117 = vector.broadcast %cst_62 : f32 to vector<1x1xf32>
    %118 = arith.divf %114, %117 : vector<1x1xf32>
    %119 = arith.mulf %116, %116 : vector<1x1xf32>
    %120 = arith.subf %118, %119 : vector<1x1xf32>
    %cst_63 = arith.constant 9.99999974E-6 : f32
    %121 = vector.broadcast %cst_63 : f32 to vector<1x1xf32>
    %122 = arith.addf %120, %121 : vector<1x1xf32>
    %123 = math.rsqrt %122 : vector<1x1xf32>
    %c0_64 = arith.constant 0 : index
    %c0_65 = arith.constant 0 : index
    %124 = vector.load %arg4[%c0_64, %c0_65] : memref<8x1xf32, #tpu.memory_space<vmem>>, vector<8x1xf32>
    %125 = vector.broadcast %123 : vector<1x1xf32> to vector<8x1xf32>
    %126 = arith.mulf %124, %125 : vector<8x1xf32>
    %127 = vector.broadcast %116 : vector<1x1xf32> to vector<8x1xf32>
    %128 = arith.subf %94, %127 : vector<8x1xf32>
    %129 = arith.mulf %128, %126 : vector<8x1xf32>
    %c0_66 = arith.constant 0 : index
    %c0_67 = arith.constant 0 : index
    %130 = vector.load %arg5[%c0_66, %c0_67] : memref<8x1xf32, #tpu.memory_space<vmem>>, vector<8x1xf32>
    %131 = arith.addf %129, %130 : vector<8x1xf32>
    %132 = vector.broadcast %126 : vector<8x1xf32> to vector<8x256xf32>
    %133 = arith.mulf %93, %132 : vector<8x256xf32>
    %134 = vector.broadcast %131 : vector<8x1xf32> to vector<8x256xf32>
    %135 = arith.addf %133, %134 : vector<8x256xf32>
    %c0_68 = arith.constant 0 : index
    %c0_69 = arith.constant 0 : index
    %c0_70 = arith.constant 0 : index
    %136 = vector.load %arg6[%c0_68, %c0_69, %c0_70] : memref<1x8x256xf32, #tpu.memory_space<vmem>>, vector<1x8x256xf32>
    %137 = vector.shape_cast %136 : vector<1x8x256xf32> to vector<8x256xf32>
    %138 = vector.shape_cast %135 : vector<8x256xf32> to vector<1x8x256xf32>
    tpu.vector_store %arg6[%c0_68, %c0_69, %c0_70], %138 {strides = array<i32>} : memref<1x8x256xf32, #tpu.memory_space<vmem>>, vector<1x8x256xf32>,
    return
  }
  func.func @transform_0(%arg0: i32) -> (i32, i32, i32) {
    %c0_i32 = arith.constant 0 : i32
    %c0_i32_0 = arith.constant 0 : i32
    %c0_i32_1 = arith.constant 0 : i32
    return %arg0, %c0_i32, %c0_i32_0 : i32, i32, i32
  }
  func.func @transform_1(%arg0: i32) -> (i32, i32, i32) {
    %c0_i32 = arith.constant 0 : i32
    %c0_i32_0 = arith.constant 0 : i32
    %c0_i32_1 = arith.constant 0 : i32
    %c0_i32_2 = arith.constant 0 : i32
    return %c0_i32, %c0_i32_0, %c0_i32_1 : i32, i32, i32
  }
  func.func @transform_2(%arg0: i32) -> (i32, i32) {
    %c0_i32 = arith.constant 0 : i32
    %c0_i32_0 = arith.constant 0 : i32
    %c0_i32_1 = arith.constant 0 : i32
    return %c0_i32, %c0_i32_0 : i32, i32
  }
  func.func @transform_3(%arg0: i32) -> (i32, i32) {
    %c0_i32 = arith.constant 0 : i32
    %c0_i32_0 = arith.constant 0 : i32
    %c0_i32_1 = arith.constant 0 : i32
    return %c0_i32, %c0_i32_0 : i32, i32
  }
  func.func @transform_4(%arg0: i32) -> (i32, i32) {
    %c0_i32 = arith.constant 0 : i32
    %c0_i32_0 = arith.constant 0 : i32
    %c0_i32_1 = arith.constant 0 : i32
    return %c0_i32, %c0_i32_0 : i32, i32
  }
  func.func @transform_5(%arg0: i32) -> (i32, i32, i32) {
    %c0_i32 = arith.constant 0 : i32
    %c0_i32_0 = arith.constant 0 : i32
    %c0_i32_1 = arith.constant 0 : i32
    return %arg0, %c0_i32, %c0_i32_0 : i32, i32, i32
  }
}

</mosaic_0001>

<bundles_post_ra>
// kernel: tpu_custom_call.1
= control target key start
LH: loop header
LB: loop body
LE: loop exit
PB: predicated region body
PF: predicated region fallthrough
CT: control target
= control target key end

     0   :  { %10 = vsyncpa [#allocation3], 0  ;;  %s1748_s0 = inlined_call_operand.vmem [shape: f32[2,4,384], index: 0, kind: input, shape index: {}]   ;;  %s1749_s1 = inlined_call_operand.vmem [shape: f32[9,8,4], index: 1, kind: input, shape index: {}]   ;;  %s1750_s2 = inlined_call_operand.vmem [shape: f32[8,1], index: 2, kind: input, shape index: {}]   ;;  %s1751_s3 = inlined_call_operand.vmem [shape: f32[8,1], index: 3, kind: input, shape index: {}]   ;;  %s1752_s4 = inlined_call_operand.vmem [shape: f32[8,1], index: 4, kind: input, shape index: {}]   ;;  %s1753_s5 = inlined_call_operand.hbm [shape: f32[2,8,256], index: 5, kind: output, shape index: {}]  }
   0x1   :  { %12 = vsyncpa [#allocation3 + $0x1], 0  ;;  %s1480_s18 = smov 0   ;;  %s1482_s19 = smov 0  }
   0x2   :  { %s1484_s20 = smov 0   ;;  %s1486_s21 = smov 0  }
   0x3 LB: > { %s1501_s22 = sadd.s32 4294967295, %s1437_s21   ;;  %s1257_s23 = sadd.s32 4294967294, %s1437_s21   ;;  %s1437_s21 = sphi %s1486_s21, %s1767_s21   ;;  %s1433_s20 = sphi %s1484_s20, %s1766_s20   ;;  %s1429_s19 = sphi %s1482_s19, %s1765_s19   ;;  %s1425_s18 = sphi %s1480_s18, %s1764_s18  }
   0x4   : > { %s1505_s24 = sadd.s32 1, %s1437_s21   ;;  %s135_s25 = sadd.s32 1, %s1433_s20 }
   0x5   : > { %s132_s26 = ssub.s32 %s1437_s21, %s1505_s24  ;;  %p145_p0 = scmp.ne.s32.totalorder %s1433_s20, %s1429_s19 }
   0x6   : > { %p133_p1 = scmp.eq.s32.totalorder %s132_s26, 0  ;;  %p146_p2 = scmp.eq.s32.totalorder %s1501_s22, 1 }
   0x7   : > { %p151_p3 = scmp.ne.s32.totalorder %s1429_s19, %s1425_s18  ;;  %p152_p4 = scmp.eq.s32.totalorder %s1257_s23, 1 }
   0x8   : > { %s1516_s27 = scalar_select %p133_p1, %s1433_s20, %s135_s25  }
   0x9   : > { %p1518_p5 = por %p146_p2, %p145_p0  ;;  %p1522_p6 = por %p152_p4, %p151_p3 }
   0xa   : > { %p1260_p7 = scmp.ge.s32.totalorder %s1437_s21, 1  ;;  %p190_p8 = scmp.lt.s32.totalorder %s1437_s21, 3 }
   0xc   : > { %p191_p9 = pnand %p1260_p7, %p190_p8 }
   0xd   : > { %p218_p10 = scmp.lt.s32.totalorder (!%p191_p9), %s1501_s22, 1  ;;  %s1439_s10 = smov (!%p191_p9), 111   ;;  %v1442_v3 = vmov (!%p191_p9), 0.0   ;;  %v223_v6 = vlaneseq (!%p191_p9)  ;;  %vm665_vm0 = vcmask (!%p191_p9), 908288   ;;  %vm302_vm1 = vcmask (!%p191_p9), 1043456   ;;  %v1278_v18 = vld [vmem:[%s1749_s1 + $0x20] sm:$0xff] (!%p191_p9) }
   0xe   : > { %194 = sbr.rel (%p191_p9) target bundleno = 746 (0x2ea), region = 40  ;;  %s1440_s11 = smov (!%p191_p9), 110   ;;  %739 = vmatprep.mubr.f32.mxu0 (!%p191_p9), %v1442_v3  ;;  %371 = vmatprep.mubr.f32.mxu1 (!%p191_p9), %v1442_v3  ;;  %vm298_vm2 = vcmask (!%p191_p9), 31744   ;;  %vm553_vm3 = vcmask (!%p191_p9), 900096   ;;  %vm564_vm4 = vcmask (!%p191_p9), 916480   ;;  %vm295_vm6 = vcmask (!%p191_p9), 1039360  }
   0xf   : > { %s1441_s12 = smov (!%p191_p9), 112   ;;  %s1443_s13 = smov (!%p191_p9), 127   ;;  %v1557_v7 = vand.u32 (!%p191_p9), 127, %v223_v6  ;;  %v1263_v32 = vld [vmem:[%s1749_s1 + $0x8] sm:$0xff] (!%p191_p9)  ;;  %vm270_vm8 = vcmask (!%p191_p9), 1031168   ;;  %vm843_vm10 = vcmask (!%p191_p9), 769024  }
  0x10   : > { %s1444_s14 = smov (!%p191_p9), 126   ;;  %s1445_s15 = smov (!%p191_p9), 94   ;;  %v1282_v36 = vld [vmem:[%s1749_s1 + $0x28] sm:$0xff] (!%p191_p9)  ;;  %vm854_vm11 = vcmask (!%p191_p9), 785408   ;;  %v286_v54 = vld [vmem:[%s1749_s1] sm:$0xff] (!%p191_p9)  ;;  %v1286_v63 = vld [vmem:[%s1749_s1 + $0x30] sm:$0xff] (!%p191_p9) }
  0x11   : > { %s1446_s16 = smov (!%p191_p9), 96   ;;  %s1447_s17 = smov (!%p191_p9), 95   ;;  %v225_v10 = vadd.s32 (!%p191_p9), 128, %v1557_v7  ;;  %v230_v25 = vand.u32 (!%p191_p9), 15, %v1557_v7  ;;  %vm955_vm13 = vcmask (!%p191_p9), 777216   ;;  %v1270_v6 = vld [vmem:[%s1749_s1 + $0x10] sm:$0xff] (!%p191_p9) }
  0x12   : > { %vm1133_vm14 = vcmask (!%p191_p9), 7168   ;;  %s1449_s25 = smov (!%p191_p9), [#allocation2]  }
  0x13   : > { %v237_v13 = vand.u32 (!%p191_p9), 15, %v225_v10  ;;  %vm1584_vm7 = vcmp.eq.s32.totalorder (!%p191_p9), %v230_v25, 15  ;;  %vm1624_vm12 = vcmp.eq.s32.totalorder (!%p191_p9), %v230_v25, 0  ;;  %s1379_s26 = sshll.u32 (!%p191_p9), %s1449_s25, 4  ;;  %s1380_s26 = int_to_ptr.vmem [resolvable:$false] %s1379_s26 }
  0x15   : > { %s219_s30 = scalar_select %p218_p10, %s1501_s22, 1  ;;  %vm1565_vm5 = vcmp.eq.s32.totalorder %v237_v13, 15  ;;  %vm1610_vm9 = vcmp.eq.s32.totalorder %v237_v13, 0 }
  0x17   : > { %s1320_s6 = smul.u32 12, %s219_s30  ;;  %s1381_s30 = scalar_lea.vmem %s1380_s26, 512 }
  0x19   : > { %s222_s9 = scalar_lea.vmem %s1748_s0, %s1320_s6 }
  0x1a   : > { %v543_v0 = vld [vmem:[%s222_s9 + $0x8] sm:$0xf]  ;;  %v1533_v1 = vld [vmem:[%s222_s9] sm:$0xff] }
  0x1b   : > { %663 = vrot.lane.b32.xlu0 %v543_v0, %s1439_s10  ;;  %659 = vrot.lane.b32.xlu1 %v1533_v1, %s1439_s10  ;;  %v1538_v2 = vcombine.high %v1533_v1, %v1533_v1  ;;  %v256_v4 = vld [vmem:[%s222_s9 + $0x8] sm:$0xf] }
  0x1c   : > { %v833_v5 = vld [vmem:[%s222_s9 + $0x8] sm:$0xf] }
  0x1f   : > { %551 = vrot.lane.b32.xlu0 %v543_v0, %s1440_s11  ;;  %549 = vrot.lane.b32.xlu1 %v1538_v2, %s1440_s11 }
  0x23   : > { %560 = vrot.lane.b32.xlu1 %v1538_v2, %s1441_s12  ;;  %661 = vrot.lane.b32.xlu0 %v1538_v2, %s1439_s10  ;;  %s215_s10 = sand.u32 1, %s1429_s19  }
  0x27   : > { %562 = vrot.lane.b32.xlu0 %v543_v0, %s1441_s12  ;;  %291 = vrot.lane.b32.xlu1 %v1538_v2, %s1443_s13 }
  0x2b   : > { %293 = vrot.lane.b32.xlu0 %v256_v4, %s1443_s13  ;;  %547 = vrot.lane.b32.xlu1 %v1533_v1, %s1440_s11  ;;  %s1261_s11 = sshll.u32 %s215_s10, 4 }
  0x2f   : > { %558 = vrot.lane.b32.xlu0 %v1533_v1, %s1441_s12  ;;  %289 = vrot.lane.b32.xlu1 %v1533_v1, %s1443_s13  ;;  %s1303_s12 = sshll.u32 %s1501_s22, 8  ;;  %s217_s13 = scalar_lea.vmem [#allocation2], %s1261_s11 }
  0x30   : > { %s1184_s22 = scalar_lea.sflag [#allocation3], %s215_s10 }
  0x33   : > { %266 = vrot.lane.b32.xlu0 %v1538_v2, %s1444_s14  ;;  %268 = vrot.lane.b32.xlu1 %v256_v4, %s1444_s14 }
  0x37   : > { %839 = vrot.lane.b32.xlu0 %v1538_v2, %s1445_s15  ;;  %841 = vrot.lane.b32.xlu1 %v833_v5, %s1445_s15 }
  0x3b   : > { %850 = vrot.lane.b32.xlu0 %v1538_v2, %s1446_s16  ;;  %852 = vrot.lane.b32.xlu1 %v833_v5, %s1446_s16 }
  0x3f   : > { %264 = vrot.lane.b32.xlu0 %v1533_v1, %s1444_s14  ;;  %837 = vrot.lane.b32.xlu1 %v1533_v1, %s1445_s15  ;;  %s1198_s14 = sshll.u32 %s217_s13, 4  ;;  %s1708_s14 = int_to_ptr.vmem [resolvable:$true] %s1198_s14 }
  0x40   : > { %s1375_s23 = scalar_lea.vmem %s1708_s14, 256  ;;  %p1382_p0 = scmp.lt.s32.totalorder %s1708_s14, %s1380_s26 }
  0x41   : > { %p1376_p11 = scmp.ne.s32.totalorder %s1708_s14, %s1375_s23  ;;  %p1383_p1 = scmp.lt.s32.totalorder %s1381_s30, %s1375_s23 }
  0x43   : > { %848 = vrot.lane.b32.xlu0 %v1533_v1, %s1446_s16  ;;  %951 = vrot.lane.b32.xlu1 %v1538_v2, %s1447_s17  ;;  %p1377_p12 = pnand %p1376_p11, %p1518_p5  ;;  %p1384_p2 = por %p1383_p1, %p1382_p0 }
  0x45   : > { %p1378_p13 = pneg %p1377_p12 }
  0x47   : > { %953 = vrot.lane.b32.xlu0 %v833_v5, %s1447_s17  ;;  %949 = vrot.lane.b32.xlu1 %v1533_v1, %s1447_s17  ;;  %s1706_s17 = scalar_lea.hbm %s1753_s5, %s1303_s12  ;;  %p1385_p3 = pnand %p1384_p2, %p1378_p13 }
  0x8d   : > { %v664_v8 = vpop.permute.xlu0 %663  ;;  %v660_v9 = vpop.permute.xlu1 %659 }
  0x91   : > { %v552_v11 = vpop.permute.xlu0 %551  ;;  %v550_v12 = vpop.permute.xlu1 %549 }
  0x92   : > { %v1571_v22 = vsel %vm553_vm3, %v550_v12, %v552_v11  ;;  %v1274_v11 = vld [vmem:[%s1749_s1 + $0x18] sm:$0xff] }
  0x95   : > { %v561_v14 = vpop.permute.xlu1 %560  ;;  %v662_v15 = vpop.permute.xlu0 %661 }
  0x96   : > { %v667_v16 = vsel %vm665_vm0, %v662_v15, %v664_v8  ;;  %v666_v17 = vsel %vm665_vm0, %v660_v9, %v662_v15  ;;  %v1290_v9 = vld [vmem:[%s1749_s1 + $0x38] sm:$0xff] }
  0x97   : > { %1279 = vmatprep.subr.msk.mxu0 %vm302_vm1, %v667_v16 }
  0x98   : > { %1280 = vmatpush1.msk.msra.mxu0 %vm302_vm1, %v666_v17 }
  0x99   : > { %v563_v20 = vpop.permute.xlu0 %562  ;;  %v292_v21 = vpop.permute.xlu1 %291  ;;  %1281 = vmatmul.mubr.msk.f32.vlgmr.msra.gmra.mrb[0].mxu0 %vm298_vm2, %v1278_v18 }
  0x9a   : > { %v1574_v23 = vsel %vm564_vm4, %v561_v14, %v563_v20  ;;  %823 = vmatprep.mubr.f32.mxu0 %v1442_v3 }
  0x9b   : > { %v572_v24 = vsel %vm1565_vm5, %v1574_v23, %v1571_v22  ;;  %v570_v62 = vsel %vm1610_vm9, %v1571_v22, %v1574_v23  ;;  %v1122_v23 = vld [vmem:[%s1750_s2] sm:$0xff] }
  0x9c   : > { %1283 = vmatprep.subr.msk.mxu0 %vm302_vm1, %v572_v24  ;;  %v1131_v24 = vmul.f32 256.0, %v1122_v23  ;;  %v1141_v25 = vmul.f32 2.0, %v1122_v23 }
  0x9d   : > { %v294_v26 = vpop.permute.xlu0 %293  ;;  %v548_v27 = vpop.permute.xlu1 %547 }
  0x9e   : > { %v297_v28 = vsel %vm295_vm6, %v292_v21, %v294_v26  ;;  %v1592_v33 = vsel %vm553_vm3, %v548_v27, %v550_v12  ;;  %v1294_v12 = vld [vmem:[%s1749_s1 + $0x40] sm:$0xff]  ;;  %v1144_v26 = vmul.f32 %v1122_v23, %v1122_v23 }
  0x9f   : > { %1264 = vmatprep.subr.msk.mxu1 %vm302_vm1, %v297_v28 }
  0xa1   : > { %v559_v30 = vpop.permute.xlu0 %558  ;;  %v290_v31 = vpop.permute.xlu1 %289 }
  0xa2   : > { %v1595_v34 = vsel %vm564_vm4, %v559_v30, %v561_v14  ;;  %v296_v35 = vsel %vm295_vm6, %v290_v31, %v292_v21  ;;  %v1145_v30 = vmul.f32 256.0, %v1144_v26 }
  0xa3   : > { %v571_v37 = vsel %vm1584_vm7, %v1595_v34, %v1592_v33  ;;  %1265 = vmatpush1.msk.msra.mxu1 %vm302_vm1, %v296_v35  ;;  %v569_v8 = vsel %vm1624_vm12, %v1592_v33, %v1595_v34 }
  0xa4   : > { %1284 = vmatpush1.msk.msra.mxu0 %vm302_vm1, %v571_v37  ;;  %1266 = vmatmul.mubr.msk.f32.vlgmr.msra.gmra.mrb[0].mxu1 %vm298_vm2, %v1263_v32 }
  0xa5   : > { %v267_v38 = vpop.permute.xlu0 %266  ;;  %v269_v39 = vpop.permute.xlu1 %268  ;;  %1285 = vmatmul.mubr.msk.f32.vlgmr.msra.gmra.mrb[0].mxu0 %vm298_vm2, %v1282_v36  ;;  %451 = vmatprep.mubr.f32.mxu1 %v1442_v3 }
  0xa6   : > { %v272_v40 = vsel %vm270_vm8, %v267_v38, %v269_v39  ;;  %938 = vmatprep.mubr.f32.mxu0 %v1442_v3 }
  0xa7   : > { %v279_v42 = vsel %vm1610_vm9, %v272_v40, %v1538_v2  ;;  %v285_v56 = vsel %vm1565_vm5, %v1538_v2, %v272_v40 }
  0xa8   : > { %1267 = vmatprep.subr.msk.mxu1 %vm302_vm1, %v279_v42 }
  0xa9   : > { %v840_v43 = vpop.permute.xlu0 %839  ;;  %v842_v44 = vpop.permute.xlu1 %841 }
  0xaa   : > { %v845_v47 = vsel %vm843_vm10, %v840_v43, %v842_v44 }
  0xad   : > { %v851_v45 = vpop.permute.xlu0 %850  ;;  %v853_v46 = vpop.permute.xlu1 %852 }
  0xae   : > { %v856_v48 = vsel %vm854_vm11, %v851_v45, %v853_v46 }
  0xaf   : > { %v860_v49 = vsel %vm1610_vm9, %v845_v47, %v856_v48  ;;  %v862_v7 = vsel %vm1565_vm5, %v856_v48, %v845_v47 }
  0xb0   : > { %1287 = vmatprep.subr.msk.mxu0 %vm302_vm1, %v860_v49 }
  0xb1   : > { %v265_v50 = vpop.permute.xlu0 %264  ;;  %v838_v51 = vpop.permute.xlu1 %837 }
  0xb2   : > { %v271_v53 = vsel %vm270_vm8, %v265_v50, %v267_v38  ;;  %v844_v60 = vsel %vm843_vm10, %v838_v51, %v840_v43 }
  0xb3   : > { %v278_v55 = vsel %vm1624_vm12, %v271_v53, %v1533_v1  ;;  %v284_v57 = vsel %vm1584_vm7, %v1533_v1, %v271_v53  ;;  %v1161_v53 = vld [vmem:[%s1751_s3] sm:$0xff] }
  0xb4   : > { %1268 = vmatpush1.msk.msra.mxu1 %vm302_vm1, %v278_v55 }
  0xb5   : > { %v849_v58 = vpop.permute.xlu0 %848  ;;  %1269 = vmatmul.mubr.msk.f32.vlgmr.msra.gmra.mrb[0].mxu1 %vm298_vm2, %v286_v54  ;;  %1271 = vmatprep.subr.msk.mxu1 %vm302_vm1, %v285_v56  ;;  %v952_v59 = vpop.permute.xlu1 %951 }
  0xb6   : > { %v855_v61 = vsel %vm854_vm11, %v849_v58, %v851_v45  ;;  %1272 = vmatpush1.msk.msra.mxu1 %vm302_vm1, %v284_v57  ;;  %533 = vmatprep.mubr.f32.mxu1 %v1442_v3  ;;  %v1165_v57 = vld [vmem:[%s1752_s4] sm:$0xff] }
  0xb7   : > { %v859_v0 = vsel %vm1624_vm12, %v844_v60, %v855_v61  ;;  %1275 = vmatprep.subr.msk.mxu1 %vm302_vm1, %v570_v62  ;;  %v861_v10 = vsel %vm1584_vm7, %v855_v61, %v844_v60 }
  0xb8   : > { %1288 = vmatpush1.msk.msra.mxu0 %vm302_vm1, %v859_v0 }
  0xb9   : > { %v954_v1 = vpop.permute.xlu0 %953  ;;  %1289 = vmatmul.mubr.msk.f32.vlgmr.msra.gmra.mrb[0].mxu0 %vm298_vm2, %v1286_v63  ;;  %v950_v2 = vpop.permute.xlu1 %949 }
  0xba   : > { %v957_v4 = vsel %vm955_vm13, %v952_v59, %v954_v1  ;;  %v956_v5 = vsel %vm955_vm13, %v950_v2, %v952_v59  ;;  %1029 = vmatprep.mubr.f32.mxu0 %v1442_v3 }
  0xbb   : > { %1291 = vmatprep.subr.msk.mxu0 %vm302_vm1, %v957_v4 }
  0xbc   : > { %1292 = vmatpush1.msk.msra.mxu0 %vm302_vm1, %v956_v5 }
  0xbd   : > { %1273 = vmatmul.mubr.msk.f32.vlgmr.msra.gmra.mrb[0].mxu1 %vm298_vm2, %v1270_v6  ;;  %1295 = vmatprep.subr.msk.mxu0 %vm302_vm1, %v862_v7 }
  0xbe   : > { %1276 = vmatpush1.msk.msra.mxu1 %vm302_vm1, %v569_v8  ;;  %648 = vmatprep.mubr.f32.mxu1 %v1442_v3 }
  0xc1   : > { %1293 = vmatmul.mubr.msk.f32.vlgmr.msra.gmra.mrb[0].mxu0 %vm298_vm2, %v1290_v9 }
  0xc2   : > { %1296 = vmatpush1.msk.msra.mxu0 %vm302_vm1, %v861_v10  ;;  %1113 = vmatprep.mubr.f32.mxu0 %v1442_v3  ;;  %v1448_v3 = vmov 0  }
  0xc3   : > { %1370 = vset.pattern.permute.xlu0 %v1448_v3  ;;  %1371 = vset.pattern.permute.xlu1 %v1448_v3 }
  0xc5   : > { %1277 = vmatmul.mubr.msk.f32.vlgmr.msra.gmra.mrb[0].mxu1 %vm298_vm2, %v1274_v11 }
  0xc9   : > { %1297 = vmatmul.mubr.msk.f32.vlgmr.msra.gmra.mrb[0].mxu0 %vm298_vm2, %v1294_v12 }
 0x198   : > { %v650_v13 = vpop.f32.mrb[0].mxu1 }
 0x199   : > { %v652_v14 = vpop.f32.mrb[1].mxu1 }
 0x19c   : > { %v1115_v15 = vpop.f32.mrb[0].mxu0 }
 0x19d   : > { %v1304_v16 = vadd.f32 %v1115_v15, %v650_v13  ;;  %v1117_v17 = vpop.f32.mrb[1].mxu0 }
 0x19e   : > { %v1305_v18 = vadd.f32 %v1117_v17, %v652_v14 }
 0x19f   : > { %v1126_v19 = vmul.f32 %v1304_v16, %v1304_v16 }
 0x1a0   : > { %v1123_v20 = vadd.f32 %v1305_v18, %v1304_v16  ;;  %v1127_v21 = vmul.f32 %v1305_v18, %v1305_v18 }
 0x1a2   : > { %1124 = vadd.xlane.f32.xlu0 %v1123_v20  ;;  %v1128_v22 = vadd.f32 %v1127_v21, %v1126_v19 }
 0x1a4   : > { %1129 = vadd.xlane.f32.xlu1 %v1128_v22 }
 0x22f   : > { %v1125_v27 = vpop.xlane.xlu0 %1124 }
 0x230   : > { %v1132_v28 = vadd.f32 %v1131_v24, %v1125_v27  ;;  %v1142_v29 = vmul.f32 %v1141_v25, %v1125_v27 }
 0x231   : > { %v1130_v31 = vpop.xlane.xlu1 %1129 }
 0x232   : > { %v1134_v32 = vsel %vm1133_vm14, %v1132_v28, 0.0  ;;  %v1143_v33 = vadd.f32 %v1142_v29, %v1130_v31 }
 0x233   : > { %v1135_v34 = vrot.slane %v1134_v32, 4 }
 0x234   : > { %v1146_v35 = vadd.f32 %v1145_v30, %v1143_v33 }
 0x235   : > { %v1136_v36 = vadd.f32 %v1135_v34, %v1134_v32 }
 0x236   : > { %v1147_v37 = vsel %vm1133_vm14, %v1146_v35, 0.0 }
 0x237   : > { %v1137_v38 = vrot.slane %v1136_v36, 2  ;;  %v1148_v39 = vrot.slane %v1147_v37, 4 }
 0x239   : > { %v1138_v40 = vadd.f32 %v1137_v38, %v1136_v36  ;;  %v1149_v41 = vadd.f32 %v1148_v39, %v1147_v37 }
 0x23b   : > { %v1139_v42 = vrot.slane %v1138_v40, 1  ;;  %v1150_v43 = vrot.slane %v1149_v41, 2 }
 0x23d   : > { %v1140_v44 = vadd.f32 %v1139_v42, %v1138_v40  ;;  %v1151_v45 = vadd.f32 %v1150_v43, %v1149_v41 }
 0x23f   : > { %v1155_v46 = vmul.f32 0.00048828125, %v1140_v44  ;;  %v1152_v47 = vrot.slane %v1151_v45, 1 }
 0x241   : > { %v1153_v48 = vadd.f32 %v1152_v47, %v1151_v45  ;;  %v1157_v49 = vmul.f32 %v1155_v46, %v1155_v46  ;;  %v1163_v56 = vsub.f32 %v1122_v23, %v1155_v46 }
 0x243   : > { %v1156_v50 = vmul.f32 0.00048828125, %v1153_v48 }
 0x245   : > { %v1158_v51 = vsub.f32 %v1156_v50, %v1157_v49 }
 0x247   : > { %v1159_v52 = vadd.f32 1e-05, %v1158_v51 }
 0x249   : > { %1373 = vrsqrt.f32 %v1159_v52 }
 0x253   : > { %v1374_v54 = vpop.eup %1373 }
 0x254   : > { %v1162_v55 = vmul.f32 %v1374_v54, %v1161_v53 }
 0x256   : > { %1169 = vperm.xlu0 %1370, %v1162_v55   ;;  %v1164_v58 = vmul.f32 %v1163_v56, %v1162_v55 }
 0x258   : > { %v1166_v59 = vadd.f32 %v1165_v57, %v1164_v58 }
 0x25a   : > { %1176 = vperm.xlu1 %1371, %v1166_v59  }
 0x2d5   : > { %v1170_v60 = vpop.permute.xlu0 %1169 }
 0x2d6   : > { %v1172_v61 = vmul.f32 %v1304_v16, %v1170_v60  ;;  %v1173_v62 = vmul.f32 %v1305_v18, %v1170_v60 }
 0x2d9   : > { %v1177_v63 = vpop.permute.xlu1 %1176 }
 0x2da   : > { %v1179_v0 = vadd.f32 %v1177_v63, %v1172_v61  ;;  %v1180_v1 = vadd.f32 %v1177_v63, %v1173_v62 }
 0x2dc   : > { %1181 = vst [vmem:[%s217_s13] sm:$0xff] %v1179_v0  ;;  %1182 = vst [vmem:[%s217_s13 + $0x8] sm:$0xff] %v1180_v1 }
 0x2dd   : > { %1388 = shalt.err (!%p1385_p3)
}
 0x2de   : > { %s1389_s6 = scalar_lea.hbm %s1706_s17, 256  ;;  %s1393_s9 = scalar_lea.hbm %s1753_s5, 512 }
 0x2df   : > { %p1390_p4 = scmp.ne.s32.totalorder %s1706_s17, %s1389_s6  ;;  %p1394_p9 = scmp.lt.u32.totalorder %s1706_s17, %s1753_s5 }
 0x2e0   : > { %p1395_p10 = scmp.lt.u32.totalorder %s1393_s9, %s1389_s6  ;;  %p1397_p12 = scmp.lt.u32.totalorder %s1389_s6, %s1706_s17 }
 0x2e1   : > { %p1391_p7 = pnand %p1390_p4, %p1518_p5 }
 0x2e2   : > { %p1396_p11 = por %p1395_p10, %p1394_p9 }
 0x2e3   : > { %p1392_p8 = pneg %p1391_p7 }
 0x2e4   : > { %p1398_p13 = por %p1397_p12, %p1396_p11 }
 0x2e6   : > { %p1399_p0 = pnand %p1398_p13, %p1392_p8 }
 0x2e8   : > { %1402 = shalt.err (!%p1399_p0)
}
 0x2e9   : > { %1321 = dma.vmem_to_hbm [thread:$0]  (%p1518_p5), %s1708_s14, 256, %s1706_s17, %s1184_s22  }
 0x2ea PF: > { %p1327_p1 = scmp.ge.s32.totalorder %s1437_s21, 2  ;;  %s1210_s12 = sand.u32 1, %s1425_s18  }
 0x2eb   : > { %s1211_s13 = scalar_lea.sflag [#allocation3], %s1210_s12 }
 0x2ec   : > { %p1324_p2 = pnand %p1327_p1, %p1522_p6 }
 0x2ee   : > { %1420 = dma.done.wait (!%p1324_p2), %s1211_s13, 256  }
 0x2ef   : > { %1422 = vsyncadd (!%p1324_p2), %s1211_s13, 4294967040  ;;  %p15_p3 = scmp.ge.s32.totalorder %s1505_s24, 4   ;;  %s1764_s18 = smov %s1429_s19 }
 0x2f0   : > { %s1765_s19 = smov %s1433_s20  ;;  %s1766_s20 = smov %s1516_s27 }
 0x2f1   : > { %s1767_s21 = smov %s1505_s24  ;;  %17 = sbr.rel (!%p15_p3) target bundleno = 3 (0x3), region = 83 }
 0x2f8   :  { %1216 = vsyncpa [#allocation3], 1 }
 0x2f9   :  { %1218 = vsyncpa [#allocation3 + $0x1], 1 }

</bundles_post_ra>
